<compile_context>
chip_gen: v5e
topology: v5e:2x2
jax: 0.10.0
libtpu: 0.0.40
codegen_flags: <defaults>
</compile_context>

<pallas_src>
import jax
import jax.numpy as jnp
from jax.experimental import pallas as pl
from jax.experimental.pallas import tpu as pltpu


_SMALL_BATCH_THRESHOLD = 1024   # below this, skip the grid/pipeline entirely
_DEFAULT_TILE_ROWS = 2048       # fits every generation's scoped-VMEM default
_MAX_TILE_ROWS = 4096           # beyond this you'd need vmem_limit_bytes
_MIN_GRID_STEPS = 4             # tiled path always gets >= this many steps
_TILE_GRAIN = 32                # covers sublane packing for f32/bf16/int8


def _round_up(n, m):
    return ((n + m - 1) // m) * m


def _mlp_kernel(x_ref, w1_ref, b1_ref, w2_ref, b2_ref, o_ref):
    """Fused Linear(13,15) -> ReLU -> Linear(15,3).

    x / W1 may be bf16; accumulation is f32 on the MXU.  The hidden
    activation stays f32 and W2 / biases are always f32, so the only extra
    rounding vs. an all-f32 reference is the bf16 cast of x and W1.
    """
    h = jnp.dot(x_ref[...], w1_ref[...], preferred_element_type=jnp.float32)
    h = jnp.maximum(h + b1_ref[...], 0.0)                      # bias + ReLU, f32
    out = jnp.dot(h, w2_ref[...], preferred_element_type=jnp.float32)
    o_ref[...] = (out + b2_ref[...]).astype(o_ref.dtype)       # (TM, 3)


def _forward_small(x, w1, b1_2d, w2, b2_2d):
    """Grid-less path: whole problem lives in VMEM, zero pipeline overhead."""
    B = x.shape[0]
    n_out = w2.shape[1]
    vmem = pl.BlockSpec(memory_space=pltpu.MemorySpace.VMEM)
    return pl.pallas_call(
        _mlp_kernel,
        out_shape=jax.ShapeDtypeStruct((B, n_out), jnp.float32),
        in_specs=[vmem, vmem, vmem, vmem, vmem],
        out_specs=vmem,
    )(x, w1, b1_2d, w2, b2_2d)


def _choose_tile(batch, tile_rows):
    """Batch tile: multiple of _TILE_GRAIN, <= tile_rows, and small enough
    that the grid has >= _MIN_GRID_STEPS steps.  Prefer a tile that divides
    the batch exactly so no pad + trailing out[:B] slice is needed."""
    target = min(tile_rows,
                 _round_up(-(-batch // _MIN_GRID_STEPS), _TILE_GRAIN))
    target = max(_TILE_GRAIN, target)
    t = target
    while t >= max(_TILE_GRAIN, target // 2):
        if batch % t == 0:
            return t
        t -= _TILE_GRAIN
    return target


def _forward_tiled(x, w1, b1_2d, w2, b2_2d, tile_rows):
    """Batch-tiled path.

    Per-block VMEM (128-lane padded, double-buffered): the x block is
    tm*128*itemsize bytes and the f32 out block tm*128*4 bytes, plus roughly
    tm*128*4 bytes of transient f32 hidden activation — ~4.5 MiB at tm=2048
    with bf16 x, well under the 16 MiB v5e scoped-VMEM default.  Weights and
    biases use constant index maps so they are DMA'd once and stay resident
    in VMEM across the whole grid.
    """
    B, d_in = x.shape
    hidden = w1.shape[1]
    n_out = w2.shape[1]

    tile_rows = max(_TILE_GRAIN, min(tile_rows, _MAX_TILE_ROWS))
    tm = _choose_tile(B, tile_rows)
    padded = _round_up(B, tm)
    if padded != B:
        # Padded rows compute ReLU(b1) @ W2 + b2 (garbage) and are dropped.
        x = jnp.pad(x, ((0, padded - B), (0, 0)))

    out = pl.pallas_call(
        _mlp_kernel,
        out_shape=jax.ShapeDtypeStruct((padded, n_out), jnp.float32),
        grid_spec=pl.GridSpec(
            grid=(padded // tm,),
            in_specs=[
                pl.BlockSpec((tm, d_in), lambda i: (i, 0)),       # x: batch-tiled
                pl.BlockSpec((d_in, hidden), lambda i: (0, 0)),   # W1: resident
                pl.BlockSpec((1, hidden), lambda i: (0, 0)),      # b1: resident
                pl.BlockSpec((hidden, n_out), lambda i: (0, 0)),  # W2: resident
                pl.BlockSpec((1, n_out), lambda i: (0, 0)),       # b2: resident
            ],
            out_specs=pl.BlockSpec((tm, n_out), lambda i: (i, 0)),
        ),
        compiler_params=pltpu.CompilerParams(
            # Independent batch tiles; with >= 4 grid steps this shards across
            # v7x's two TensorCores (no-op on single-core v5e/v6e).
            dimension_semantics=("parallel",),
        ),
    )(x, w1, b1_2d, w2, b2_2d)
    return out[:B] if padded != B else out


def logistic_regression_forward(x, w1, b1, w2, b2, *,
                                tile_rows=_DEFAULT_TILE_ROWS,
                                use_bf16_inputs=True):
    """Forward pass of LogisticRegression: ReLU(x @ w1 + b1) @ w2 + b2.

    x: (B, 13); w1: (13, 15); b1: (15,); w2: (15, 3); b2: (3,).

    use_bf16_inputs=True (default) casts x and W1 to bf16, halving the
    dominant HBM read stream in this mem-bound regime; the hidden activation,
    W2, biases and the output stay f32.  Pass False for a bit-faithful f32
    path.  tile_rows is clamped to 4096 so tiles always fit the scoped-VMEM
    default of every TPU generation without a vmem_limit_bytes override.
    """
    b1_2d = b1.reshape(1, -1).astype(jnp.float32)
    b2_2d = b2.reshape(1, -1).astype(jnp.float32)
    w2 = w2.astype(jnp.float32)                 # tiny (15x3); keep f32 always
    if use_bf16_inputs:
        x = x.astype(jnp.bfloat16)
        w1 = w1.astype(jnp.bfloat16)
    else:
        x = x.astype(jnp.float32)
        w1 = w1.astype(jnp.float32)

    if x.shape[0] <= _SMALL_BATCH_THRESHOLD:
        return _forward_small(x, w1, b1_2d, w2, b2_2d)
    return _forward_tiled(x, w1, b1_2d, w2, b2_2d, tile_rows)


def init_params(key, input_size=13, hidden=15, num_classes=3):
    # Deterministic init mimicking PyTorch nn.Linear: U(-1/sqrt(fan_in), +).
    k1, k2, k3, k4 = jax.random.split(key, 4)
    bound1 = 1.0 / jnp.sqrt(jnp.float32(input_size))
    bound2 = 1.0 / jnp.sqrt(jnp.float32(hidden))
    # Stored as (in_features, out_features) = W.T relative to PyTorch.
    w1 = jax.random.uniform(k1, (input_size, hidden), jnp.float32, -bound1, bound1)
    b1 = jax.random.uniform(k2, (hidden,), jnp.float32, -bound1, bound1)
    w2 = jax.random.uniform(k3, (hidden, num_classes), jnp.float32, -bound2, bound2)
    b2 = jax.random.uniform(k4, (num_classes,), jnp.float32, -bound2, bound2)
    return w1, b1, w2, b2


def _reference_f32(x, w1, b1, w2, b2):
    return jnp.maximum(x @ w1 + b1, 0.0) @ w2 + b2


def _reference_bf16(x, w1, b1, w2, b2):
    # Same rounding as the kernel's default path: bf16 x/W1, f32 elsewhere.
    h = jnp.dot(x.astype(jnp.bfloat16), w1.astype(jnp.bfloat16),
                preferred_element_type=jnp.float32)
    return jnp.maximum(h + b1, 0.0) @ w2 + b2


if __name__ == "__main__":
    key = jax.random.PRNGKey(0)
    k_x, k_x2, k_p = jax.random.split(key, 3)

    input_size = 13
    num_classes = 3
    w1, b1, w2, b2 = init_params(k_p, input_size, 15, num_classes)

    # Path 1: small batch -> grid-less, fully VMEM-resident kernel (f32 path).
    batch_small = 8
    x_small = jax.random.normal(k_x, (batch_small, input_size), jnp.float32)
    out_small = jax.block_until_ready(
        logistic_regression_forward(x_small, w1, b1, w2, b2,
                                    use_bf16_inputs=False))
    ref_small = _reference_f32(x_small, w1, b1, w2, b2)
    assert out_small.shape == (batch_small, num_classes)
    assert jnp.allclose(out_small, ref_small, atol=1e-5, rtol=1e-5)

    # Path 2: larger batch -> batch-tiled pipeline (tm=512, 4 grid steps), f32.
    batch_big = 2048
    x_big = jax.random.normal(k_x2, (batch_big, input_size), jnp.float32)
    out_big_f32 = jax.block_until_ready(
        logistic_regression_forward(x_big, w1, b1, w2, b2,
                                    use_bf16_inputs=False))
    ref_big = _reference_f32(x_big, w1, b1, w2, b2)
    assert out_big_f32.shape == (batch_big, num_classes)
    assert jnp.allclose(out_big_f32, ref_big, atol=1e-5, rtol=1e-5)

    # Path 3: default production path (bf16 x/W1, f32 accumulation/output).
    out_big_bf16 = jax.block_until_ready(
        logistic_regression_forward(x_big, w1, b1, w2, b2))
    assert out_big_bf16.shape == (batch_big, num_classes)
    assert jnp.allclose(out_big_bf16, _reference_bf16(x_big, w1, b1, w2, b2),
                        atol=1e-3, rtol=1e-3)
    assert jnp.allclose(out_big_bf16, ref_big, atol=5e-2, rtol=5e-2)

    print("KERNEL_OK")
</pallas_src>

<mosaic_0001>
module attributes {stable_mosaic.version = 11 : i64} {
  func.func @_mlp_kernel(%arg0: memref<8x13xf32, #tpu.memory_space<vmem>>, %arg1: memref<13x15xf32, #tpu.memory_space<vmem>>, %arg2: memref<1x15xf32, #tpu.memory_space<vmem>>, %arg3: memref<15x3xf32, #tpu.memory_space<vmem>>, %arg4: memref<1x3xf32, #tpu.memory_space<vmem>>, %arg5: memref<8x3xf32, #tpu.memory_space<vmem>>) attributes {dimension_semantics = [], scalar_prefetch = 0 : i64, scratch_operands = 0 : i64, tpu.core_type = #tpu.core_type<tc>} {
    %c0 = arith.constant 0 : index
    %c0_0 = arith.constant 0 : index
    %0 = vector.load %arg0[%c0, %c0_0] : memref<8x13xf32, #tpu.memory_space<vmem>>, vector<8x13xf32>
    %c0_1 = arith.constant 0 : index
    %c0_2 = arith.constant 0 : index
    %1 = vector.load %arg1[%c0_1, %c0_2] : memref<13x15xf32, #tpu.memory_space<vmem>>, vector<13x15xf32>
    %cst = arith.constant dense<0.000000e+00> : vector<8x15xf32>
    %2 = tpu.matmul %0, %1, %cst {dimension_numbers = #tpu.dot_dimension_numbers<[1], [0], [0], [1], [0, 0, 1, 1], [], []>} : vector<8x13xf32>, vector<13x15xf32>, vector<8x15xf32> -> vector<8x15xf32>
    %c0_3 = arith.constant 0 : index
    %c0_4 = arith.constant 0 : index
    %3 = vector.load %arg2[%c0_3, %c0_4] : memref<1x15xf32, #tpu.memory_space<vmem>>, vector<1x15xf32>
    %4 = vector.broadcast %3 : vector<1x15xf32> to vector<8x15xf32>
    %5 = arith.addf %2, %4 : vector<8x15xf32>
    %cst_5 = arith.constant 0.000000e+00 : f32
    %6 = vector.broadcast %cst_5 : f32 to vector<8x15xf32>
    %7 = arith.maximumf %5, %6 : vector<8x15xf32>
    %c0_6 = arith.constant 0 : index
    %c0_7 = arith.constant 0 : index
    %8 = vector.load %arg3[%c0_6, %c0_7] : memref<15x3xf32, #tpu.memory_space<vmem>>, vector<15x3xf32>
    %cst_8 = arith.constant dense<0.000000e+00> : vector<8x3xf32>
    %9 = tpu.matmul %7, %8, %cst_8 {dimension_numbers = #tpu.dot_dimension_numbers<[1], [0], [0], [1], [0, 0, 1, 1], [], []>} : vector<8x15xf32>, vector<15x3xf32>, vector<8x3xf32> -> vector<8x3xf32>
    %c0_9 = arith.constant 0 : index
    %c0_10 = arith.constant 0 : index
    %10 = vector.load %arg4[%c0_9, %c0_10] : memref<1x3xf32, #tpu.memory_space<vmem>>, vector<1x3xf32>
    %11 = vector.broadcast %10 : vector<1x3xf32> to vector<8x3xf32>
    %12 = arith.addf %9, %11 : vector<8x3xf32>
    %c0_11 = arith.constant 0 : index
    %c0_12 = arith.constant 0 : index
    %13 = vector.load %arg5[%c0_11, %c0_12] : memref<8x3xf32, #tpu.memory_space<vmem>>, vector<8x3xf32>
    tpu.vector_store %arg5[%c0_11, %c0_12], %12 {strides = array<i32>} : memref<8x3xf32, #tpu.memory_space<vmem>>, vector<8x3xf32>,
    return
  }
}

</mosaic_0001>

<bundles_post_ra>
// kernel: tpu_custom_call.1
= control target key start
LH: loop header
LB: loop body
LE: loop exit
PB: predicated region body
PF: predicated region fallthrough
CT: control target
= control target key end

     0   :  { %10 = vsyncpa [#allocation3], 0  ;;  %s144_s21 = smov [#allocation2]   ;;  %s199_s0 = inlined_call_operand.hbm [shape: f32[8,13], index: 0, kind: input, shape index: {}]   ;;  %s200_s1 = inlined_call_operand.vmem [shape: f32[13,15], index: 1, kind: input, shape index: {}]   ;;  %s201_s2 = inlined_call_operand.vmem [shape: f32[1,15], index: 2, kind: input, shape index: {}]   ;;  %s202_s3 = inlined_call_operand.vmem [shape: f32[15,3], index: 3, kind: input, shape index: {}]   ;;  %s203_s4 = inlined_call_operand.vmem [shape: f32[1,3], index: 4, kind: input, shape index: {}]   ;;  %s204_s5 = inlined_call_operand.vmem [shape: f32[8,3], index: 5, kind: output, shape index: {}]  }
   0x1   :  { %s16_s20 = sshll.u32 %s199_s0, 4  ;;  %s18_s22 = sshll.u32 %s144_s21, 4  ;;  %s17_s20 = int_to_ptr.hbm [resolvable:$true] %s16_s20  ;;  %s19_s22 = int_to_ptr.vmem [resolvable:$true] %s18_s22 }
   0x2   :  { %21 = dma.hbm_to_vmem [thread:$0]  %s17_s20, 128, %s19_s22, [#allocation3]  }
   0x3   :  { %142 = dma.done.wait [#allocation3], 128  }
   0x4   :  { %143 = vsyncadd [#allocation3], 4294967168  ;;  %vm45_vm0 = vcmask 1044480   ;;  %v36_v0 = vld [vmem:[%s200_s1 + $0x8] sm:$0x1f]  ;;  %v35_v1 = vld [vmem:[%s200_s1] sm:$0xff] }
   0x5   :  { %111 = vmatpush.msk.msra.mxu0 %vm45_vm0, %v36_v0  ;;  %v34_v2 = vld [vmem:[#allocation2] sm:$0xff]  ;;  %vm41_vm1 = vcmask 105472   ;;  %v71_v3 = vld [vmem:[%s202_s3 + $0x8] sm:$0x7f]  ;;  %vm80_vm2 = vcmask 1046528   ;;  %vm76_vm3 = vcmask 121856  }
   0x6   :  { %113 = vmatpush.msk.msra.mxu1 %vm80_vm2, %v71_v3  ;;  %v70_v4 = vld [vmem:[%s202_s3] sm:$0xff]  ;;  %vm104_vm4 = vcmask 23552  }
   0x7   :  { %64 = vmatpush.msra.mxu0 %v35_v1  ;;  %v116_v5 = vld [vmem:[%s201_s2] ss:$0 sm:$0xff] }
   0x8   :  { %112 = vmatmul.msk.f32.vlgmr.msra.gmra.mxu0 %vm41_vm1, %v34_v2  ;;  %99 = vmatpush.msra.mxu1 %v70_v4  ;;  %v117_v9 = vld [vmem:[%s203_s4] ss:$0 sm:$0xff] }
  0x85   :  { %v66_v6 = vpop.f32.mrf.mxu0 }
  0x86   :  { %v67_v7 = vadd.f32 %v116_v5, %v66_v6 }
  0x88   :  { %v69_v8 = vmax.f32 %v67_v7, 0.0 }
  0x8a   :  { %114 = vmatmul.msk.f32.vlgmr.msra.gmra.mxu1 %vm76_vm3, %v69_v8 }
 0x107   :  { %v101_v10 = vpop.f32.mrf.mxu1 }
 0x108   :  { %v102_v11 = vadd.f32 %v117_v9, %v101_v10 }
 0x10a   :  { %105 = vst.msk [vmem:[%s204_s5] sm:$0xff] %vm104_vm4, %v102_v11 }
 0x10b   :  { %110 = vsyncpa [#allocation3], 1 }

</bundles_post_ra>
